<compile_context>
chip_gen: v6e
topology: v6e:2x2x1
jax: 0.10.0
libtpu: 0.0.40
codegen_flags: <defaults>
</compile_context>

<pallas_src>
import functools
import math

import jax
import jax.numpy as jnp
from jax.experimental import pallas as pl
from jax.experimental.pallas import tpu as pltpu


# ---------------------------------------------------------------------------
# In-kernel math
# ---------------------------------------------------------------------------
def _log_probs(x, *, smooth, from_logits):
    """log(clip(p, smooth, 1)) over the channel (sublane) axis, p from x."""
    if from_logits:
        # softmax(x) <= 1, so the upper clip is a no-op and
        # log(clip(softmax(x), smooth, 1)) == max(log_softmax(x), log(smooth)).
        m = jnp.max(x, axis=0, keepdims=True)
        xs = x - m
        lse = jnp.log(jnp.sum(jnp.exp(xs), axis=0, keepdims=True))
        return jnp.maximum(xs - lse, jnp.float32(math.log(smooth)))
    return jnp.log(jnp.clip(x, jnp.float32(smooth), jnp.float32(1.0)))


def _nll_tile(yo_ref, yt_ref, *, smooth, from_logits, int_labels):
    """Per-element -y_true * log(p) on a (C, TM) tile."""
    x = yo_ref[...].astype(jnp.float32)                           # (C, TM)
    logp = _log_probs(x, smooth=smooth, from_logits=from_logits)
    if int_labels:
        # Fast path: targets are integer class labels, (1, TM) int32.
        lbl = yt_ref[...].astype(jnp.int32)                       # (1, TM)
        ch = jax.lax.broadcasted_iota(jnp.int32, logp.shape, 0)
        return jnp.where(ch == lbl, -logp, jnp.float32(0.0))
    t = yt_ref[...].astype(jnp.float32)                           # (C, TM)
    return -t * logp


def _ce_sum_kernel(yo_ref, yt_ref, out_ref, *, smooth, from_logits,
                   int_labels, hw, tm, needs_mask):
    """One f32 partial sum of the per-pixel CE for this (batch, tile) cell."""
    nll = _nll_tile(yo_ref, yt_ref, smooth=smooth, from_logits=from_logits,
                    int_labels=int_labels)

    def _write(v):
        # Two-stage reduce (sublane then lane) -> (1, 1); both go to the XLU,
        # which has slack in this HBM-bound kernel.
        out_ref[...] = jnp.sum(jnp.sum(v, axis=0, keepdims=True),
                               axis=1, keepdims=True)

    if needs_mask:
        i = pl.program_id(1)
        last = pl.num_programs(1) - 1

        @pl.when(i != last)
        def _():
            _write(nll)           # full tiles: no iota/compare/select cost

        @pl.when(i == last)
        def _():
            # Select (NOT multiply-by-mask) so garbage / NaN lanes read past
            # HW in the partial last tile are discarded.
            lane = jax.lax.broadcasted_iota(jnp.int32, nll.shape, 1) + i * tm
            _write(jnp.where(lane < hw, nll, jnp.float32(0.0)))
    else:
        _write(nll)


def _ce_elem_kernel(yo_ref, yt_ref, out_ref, *, smooth, from_logits,
                    int_labels):
    """Per-pixel cross entropy, (1, TM) lane-dense output row."""
    nll = _nll_tile(yo_ref, yt_ref, smooth=smooth, from_logits=from_logits,
                    int_labels=int_labels)
    # Out-of-range lanes of a partial last tile are clipped at write-back.
    out_ref[...] = jnp.sum(nll, axis=0, keepdims=True)


# ---------------------------------------------------------------------------
# Tile sizing / compiler params (per TPU generation)
# ---------------------------------------------------------------------------
def _vmem_capacity_bytes():
    try:
        info = pltpu.get_tpu_info()
        cap = int(getattr(info, "vmem_capacity_bytes", 0))
        if cap > 0:
            return cap
    except Exception:
        pass
    return 64 * 1024 * 1024      # conservative fallback (v7x per-TC VMEM)


def _pick_tile(hw, c, logit_lane_bytes, target_lane_bytes):
    """Largest lane tile whose working set fits comfortably in VMEM."""
    vmem = _vmem_capacity_bytes()
    # Double-buffered input blocks + in-kernel f32 temporaries; stay well under
    # per-core VMEM (64 MiB on v7x, 128 MiB on v5e/v6e) so per-step blocks are
    # multiple MiB and the ~0.35us grid-step overhead amortizes to <~10%.
    budget = min(vmem // 2, 40 * 1024 * 1024)
    per_lane = (2 * (logit_lane_bytes + target_lane_bytes)   # 2 pipeline bufs each
                + 4 * c * 4                                  # live f32 temporaries
                + 8)                                         # output lanes
    tm = max(128, budget // per_lane)
    if hw <= tm:
        return hw                 # whole row in one tile: block dim == array dim
    return max(128, (tm // 128) * 128)


def _compiler_params():
    vmem = _vmem_capacity_bytes()
    limit = max(min(vmem * 3 // 4, 96 * 1024 * 1024), 32 * 1024 * 1024)
    return pltpu.CompilerParams(
        dimension_semantics=("parallel", "parallel"),
        vmem_limit_bytes=int(limit))


# ---------------------------------------------------------------------------
# Public entry point
# ---------------------------------------------------------------------------
def cross_entropy(y_output, y_true, *, reduction=True, from_logits=True,
                  smooth=1e-6, tile_lanes=None):
    """Pallas implementation of the PyTorch CrossEntropy module forward.

    y_true may be either a dense target with the same NCHW shape as y_output
    (the PyTorch module's contract; supports soft labels) or integer class
    labels of shape (N, H, W) -- a fast path that halves HBM traffic.
    `tile_lanes` optionally caps the lane-tile size (used for testing the
    multi-tile / partial-tile paths at small shapes).
    """
    N, C, H, W = y_output.shape
    HW = H * W

    if y_true.shape == y_output.shape:
        int_labels = False
        yt = y_true.reshape(N, C, HW)
        tgt_lane_bytes = C * jnp.dtype(y_true.dtype).itemsize
        tgt_rows = C
    elif y_true.shape == (N, H, W) and jnp.issubdtype(y_true.dtype, jnp.integer):
        int_labels = True
        yt = y_true.reshape(N, 1, HW).astype(jnp.int32)
        tgt_lane_bytes = 4
        tgt_rows = 1
    else:
        raise ValueError(
            f"y_true must have shape {y_output.shape} (dense targets) or "
            f"{(N, H, W)} with integer dtype (class labels); got "
            f"{y_true.shape} / {y_true.dtype}")

    yo = y_output.reshape(N, C, HW)   # pure reshape: no HBM transpose/pad copy

    if tile_lanes is None:
        TM = _pick_tile(HW, C, C * jnp.dtype(y_output.dtype).itemsize,
                        tgt_lane_bytes)
    else:
        TM = HW if HW <= tile_lanes else max(128, (tile_lanes // 128) * 128)

    n_tiles = pl.cdiv(HW, TM)
    grid = (N, n_tiles)
    needs_mask = (HW % TM) != 0

    in_specs = [
        pl.BlockSpec((None, C, TM), lambda n, i: (n, 0, i)),
        pl.BlockSpec((None, tgt_rows, TM), lambda n, i: (n, 0, i)),
    ]

    if reduction:
        kernel = functools.partial(
            _ce_sum_kernel, smooth=smooth, from_logits=from_logits,
            int_labels=int_labels, hw=HW, tm=TM, needs_mask=needs_mask)
        partials = pl.pallas_call(
            kernel,
            out_shape=jax.ShapeDtypeStruct((N, n_tiles, 1, 1), jnp.float32),
            grid_spec=pltpu.PrefetchScalarGridSpec(
                num_scalar_prefetch=0,
                grid=grid,
                in_specs=in_specs,
                out_specs=pl.BlockSpec((None, None, 1, 1),
                                       lambda n, i: (n, i, 0, 0)),
            ),
            compiler_params=_compiler_params(),
        )(yo, yt)
        # Tiny host-side combine of the per-(batch, tile) partials.
        return jnp.sum(partials) / jnp.float32(N * HW)

    kernel = functools.partial(
        _ce_elem_kernel, smooth=smooth, from_logits=from_logits,
        int_labels=int_labels)
    out = pl.pallas_call(
        kernel,
        out_shape=jax.ShapeDtypeStruct((N, 1, HW), jnp.float32),
        grid_spec=pltpu.PrefetchScalarGridSpec(
            num_scalar_prefetch=0,
            grid=grid,
            in_specs=in_specs,
            out_specs=pl.BlockSpec((None, 1, TM), lambda n, i: (n, 0, i)),
        ),
        compiler_params=_compiler_params(),
    )(yo, yt)
    return out.reshape(N, H, W)


# ---------------------------------------------------------------------------
# Reference & self-test
# ---------------------------------------------------------------------------
def _reference(y_output, y_true, reduction=True, from_logits=True,
               smooth=1e-6):
    if from_logits:
        y_pred = jax.nn.softmax(y_output, axis=1)
    else:
        y_pred = y_output
    y_pred = jnp.clip(y_pred, smooth, 1.0)
    nll = -y_true * jnp.log(y_pred)
    loss = jnp.sum(nll, axis=1)
    return jnp.mean(loss) if reduction else loss


if __name__ == "__main__":
    key = jax.random.PRNGKey(0)
    k1, k2 = jax.random.split(key)

    N, C, H, W = 2, 4, 16, 16
    y_output = jax.random.normal(k1, (N, C, H, W), dtype=jnp.float32)
    labels = jax.random.randint(k2, (N, H, W), 0, C)
    y_true = jax.nn.one_hot(labels, C, axis=1, dtype=jnp.float32)

    # reduction=True (module default), dense one-hot targets, from_logits=True
    loss = jax.block_until_ready(cross_entropy(y_output, y_true,
                                               reduction=True))
    ref = _reference(y_output, y_true, reduction=True)
    assert jnp.allclose(loss, ref, rtol=1e-5, atol=1e-5), (loss, ref)

    # reduction=False (per-pixel loss map)
    loss_map = jax.block_until_ready(cross_entropy(y_output, y_true,
                                                   reduction=False))
    ref_map = _reference(y_output, y_true, reduction=False)
    assert loss_map.shape == (N, H, W)
    assert jnp.allclose(loss_map, ref_map, rtol=1e-5, atol=1e-5)

    # Integer-label fast path (same semantics as hard one-hot targets).
    loss_lbl = jax.block_until_ready(cross_entropy(y_output, labels,
                                                   reduction=True))
    assert jnp.allclose(loss_lbl, ref, rtol=1e-5, atol=1e-5), (loss_lbl, ref)
    map_lbl = jax.block_until_ready(cross_entropy(y_output, labels,
                                                  reduction=False))
    assert jnp.allclose(map_lbl, ref_map, rtol=1e-5, atol=1e-5)

    # from_logits=False path (inputs already probabilities)
    probs = jax.nn.softmax(y_output, axis=1)
    loss_p = jax.block_until_ready(cross_entropy(probs, y_true,
                                                 reduction=True,
                                                 from_logits=False))
    ref_p = _reference(probs, y_true, reduction=True, from_logits=False)
    assert jnp.allclose(loss_p, ref_p, rtol=1e-5, atol=1e-5), (loss_p, ref_p)

    # Force multiple lane tiles with a partial last tile to exercise the
    # masked / multi-step grid path at small shapes.
    H2, W2 = 18, 18                      # HW = 324 = 2*128 + 68
    y2 = jax.random.normal(k1, (N, C, H2, W2), dtype=jnp.float32)
    l2 = jax.random.randint(k2, (N, H2, W2), 0, C)
    t2 = jax.nn.one_hot(l2, C, axis=1, dtype=jnp.float32)
    loss2 = jax.block_until_ready(
        cross_entropy(y2, t2, reduction=True, tile_lanes=128))
    ref2 = _reference(y2, t2, reduction=True)
    assert jnp.allclose(loss2, ref2, rtol=1e-5, atol=1e-5), (loss2, ref2)
    map2 = jax.block_until_ready(
        cross_entropy(y2, l2, reduction=False, tile_lanes=128))
    refmap2 = _reference(y2, t2, reduction=False)
    assert jnp.allclose(map2, refmap2, rtol=1e-5, atol=1e-5)

    print("KERNEL_OK")
</pallas_src>

<mosaic_0001>
module attributes {stable_mosaic.version = 11 : i64} {
  func.func @_ce_sum_kernel(%arg0: i32, %arg1: i32, %arg2: memref<1x4x256xf32, #tpu.memory_space<vmem>>, %arg3: memref<1x4x256xf32, #tpu.memory_space<vmem>>, %arg4: memref<1x1x1x1xf32, #tpu.memory_space<vmem>>) attributes {dimension_semantics = [#tpu.dimension_semantics<parallel>, #tpu.dimension_semantics<parallel>], iteration_bounds = array<i64: 2, 1>, scalar_prefetch = 0 : i64, scratch_operands = 0 : i64, tpu.core_type = #tpu.core_type<tc>, window_params = [{transform_indices = @transform_0, window_bounds = array<i64: 1, 4, 256>}, {transform_indices = @transform_1, window_bounds = array<i64: 1, 4, 256>}, {transform_indices = @transform_2, window_bounds = array<i64: 1, 1, 1, 1>}]} {
    %c0 = arith.constant 0 : index
    %c0_0 = arith.constant 0 : index
    %c0_1 = arith.constant 0 : index
    %0 = vector.load %arg2[%c0, %c0_0, %c0_1] : memref<1x4x256xf32, #tpu.memory_space<vmem>>, vector<1x4x256xf32>
    %1 = vector.shape_cast %0 : vector<1x4x256xf32> to vector<4x256xf32>
    %cst = arith.constant dense<0xFF800000> : vector<256xf32>
    %2 = vector.multi_reduction <maximumf>, %1, %cst [0] : vector<4x256xf32> to vector<256xf32>
    %3 = vector.shape_cast %2 : vector<256xf32> to vector<1x256xf32>
    %4 = vector.broadcast %3 : vector<1x256xf32> to vector<4x256xf32>
    %5 = arith.subf %1, %4 : vector<4x256xf32>
    %6 = math.exp %5 : vector<4x256xf32>
    %cst_2 = arith.constant dense<0.000000e+00> : vector<256xf32>
    %7 = vector.multi_reduction <add>, %6, %cst_2 [0] : vector<4x256xf32> to vector<256xf32>
    %8 = vector.shape_cast %7 : vector<256xf32> to vector<1x256xf32>
    %9 = math.log %8 : vector<1x256xf32>
    %10 = vector.broadcast %9 : vector<1x256xf32> to vector<4x256xf32>
    %11 = arith.subf %5, %10 : vector<4x256xf32>
    %cst_3 = arith.constant -13.8155107 : f32
    %12 = vector.broadcast %cst_3 : f32 to vector<4x256xf32>
    %13 = arith.maximumf %11, %12 : vector<4x256xf32>
    %c0_4 = arith.constant 0 : index
    %c0_5 = arith.constant 0 : index
    %c0_6 = arith.constant 0 : index
    %14 = vector.load %arg3[%c0_4, %c0_5, %c0_6] : memref<1x4x256xf32, #tpu.memory_space<vmem>>, vector<1x4x256xf32>
    %15 = vector.shape_cast %14 : vector<1x4x256xf32> to vector<4x256xf32>
    %cst_7 = arith.constant 0.000000e+00 : f32
    %16 = vector.broadcast %cst_7 : f32 to vector<4x256xf32>
    %17 = arith.subf %16, %15 : vector<4x256xf32>
    %18 = arith.mulf %17, %13 : vector<4x256xf32>
    %cst_8 = arith.constant dense<0.000000e+00> : vector<256xf32>
    %19 = vector.multi_reduction <add>, %18, %cst_8 [0] : vector<4x256xf32> to vector<256xf32>
    %20 = vector.shape_cast %19 : vector<256xf32> to vector<1x256xf32>
    %cst_9 = arith.constant dense<0.000000e+00> : vector<1xf32>
    %21 = vector.multi_reduction <add>, %20, %cst_9 [1] : vector<1x256xf32> to vector<1xf32>
    %22 = vector.shape_cast %21 : vector<1xf32> to vector<1x1xf32>
    %c0_10 = arith.constant 0 : index
    %c0_11 = arith.constant 0 : index
    %c0_12 = arith.constant 0 : index
    %c0_13 = arith.constant 0 : index
    %23 = vector.load %arg4[%c0_10, %c0_11, %c0_12, %c0_13] : memref<1x1x1x1xf32, #tpu.memory_space<vmem>>, vector<1x1x1x1xf32>
    %24 = vector.shape_cast %23 : vector<1x1x1x1xf32> to vector<1x1xf32>
    %25 = vector.shape_cast %22 : vector<1x1xf32> to vector<1x1x1x1xf32>
    tpu.vector_store %arg4[%c0_10, %c0_11, %c0_12, %c0_13], %25 {strides = array<i32>} : memref<1x1x1x1xf32, #tpu.memory_space<vmem>>, vector<1x1x1x1xf32>,
    return
  }
  func.func @transform_0(%arg0: i32, %arg1: i32) -> (i32, i32, i32) {
    %c0_i32 = arith.constant 0 : i32
    %c0_i32_0 = arith.constant 0 : i32
    return %arg0, %c0_i32, %arg1 : i32, i32, i32
  }
  func.func @transform_1(%arg0: i32, %arg1: i32) -> (i32, i32, i32) {
    %c0_i32 = arith.constant 0 : i32
    %c0_i32_0 = arith.constant 0 : i32
    return %arg0, %c0_i32, %arg1 : i32, i32, i32
  }
  func.func @transform_2(%arg0: i32, %arg1: i32) -> (i32, i32, i32, i32) {
    %c0_i32 = arith.constant 0 : i32
    %c0_i32_0 = arith.constant 0 : i32
    %c0_i32_1 = arith.constant 0 : i32
    return %arg0, %arg1, %c0_i32, %c0_i32_0 : i32, i32, i32, i32
  }
}

</mosaic_0001>

<bundles_post_ra>
// kernel: tpu_custom_call.1
= control target key start
LH: loop header
LB: loop body
LE: loop exit
PB: predicated region body
PF: predicated region fallthrough
CT: control target
= control target key end

     0   :  { %7 = vsyncpa [#allocation3], 0  ;;  %s758_s0 = inlined_call_operand.hbm [shape: f32[2,4,256], index: 0, kind: input, shape index: {}]   ;;  %s759_s1 = inlined_call_operand.hbm [shape: f32[2,4,256], index: 1, kind: input, shape index: {}]   ;;  %s760_s2 = inlined_call_operand.vmem [shape: f32[2,1,1,1], index: 2, kind: output, shape index: {}]  }
   0x1   :  { %9 = vsyncpa [#allocation3 + $0x1], 0 }
   0x2   :  { %10 = vsyncpa [#allocation5], 0 }
   0x3   :  { %12 = vsyncpa [#allocation5 + $0x1], 0  ;;  %s623_s9 = smov 0   ;;  %s625_s10 = smov 0  }
   0x4   :  { %s627_s11 = smov 0   ;;  %s629_s12 = smov 0  }
   0x5   :  { %s631_s13 = smov 0   ;;  %s633_s14 = smov 0  }
   0x6 LB: > { %s410_s15 = sadd.s32 4294967295, %s604_s14   ;;  %s30_s16 = sadd.s32 1, %s600_s13  ;;  %s604_s14 = sphi %s633_s14, %s18_s14   ;;  %s600_s13 = sphi %s631_s13, %s769_s13   ;;  %s596_s12 = sphi %s629_s12, %s768_s12   ;;  %s592_s11 = sphi %s627_s11, %s767_s11   ;;  %s588_s10 = sphi %s625_s10, %s766_s10   ;;  %s584_s9 = sphi %s623_s9, %s765_s9  }
   0x7   : > { %p32_p0 = scmp.ge.s32.totalorder %s30_s16, 2  ;;  %s39_s17 = sadd.s32 1, %s592_s11 }
   0x8   : > { %p46_p1 = scmp.ne.s32.totalorder %s592_s11, %s588_s10  ;;  %p47_p2 = scmp.eq.s32.totalorder %s604_s14, 0 }
   0x9   : > { %s771_s16 = smov (%p32_p0, %s30_s16), 0  ;;  %p52_p4 = scmp.ne.s32.totalorder %s588_s10, %s584_s9 }
   0xa   : > { %p659_p3 = por %p47_p2, %p46_p1  ;;  %s34_s19 = ssub.s32 %s600_s13, %s771_s16 }
   0xb   : > { %p53_p5 = scmp.eq.s32.totalorder %s410_s15, 0  ;;  %p37_p6 = scmp.eq.s32.totalorder %s34_s19, 0 }
   0xc   : > { %p438_p8 = scmp.lt.s32.totalorder %s604_s14, 2  ;;  %s675_s22 = sand.u32 1, %s592_s11  }
   0xd   : > { %p666_p7 = por %p53_p5, %p52_p4  ;;  %s425_s23 = sshll.u32 %s600_s13, 7 }
   0xe   : > { %s672_s21 = scalar_select %p37_p6, %s592_s11, %s39_s17  }
   0xf   : > { %s414_s24 = sshll.u32 %s675_s22, 3  ;;  %s144_s27 = scalar_lea.hbm %s758_s0, %s425_s23 }
  0x10   : > { %s136_s28 = scalar_lea.vmem [#allocation2], %s414_s24  ;;  %p684_p9 = pnand %p438_p8, %p659_p3 }
  0x11   : > { %s146_s29 = sshll.u32 %s136_s28, 4  ;;  %p420_p10 = scmp.ge.s32.totalorder %s604_s14, 1  ;;  %s147_s29 = int_to_ptr.vmem [resolvable:$true] %s146_s29 }
  0x12   : > { %p172_p11 = scmp.lt.s32.totalorder %s604_s14, 3  ;;  %s133_s3 = scalar_lea.sflag [#allocation3], %s675_s22 }
  0x13   : > { %p496_p12 = pneg %p684_p9  ;;  %s507_s4 = scalar_lea.vmem %s147_s29, 128 }
  0x14   : > { %p508_p13 = scmp.ne.s32.totalorder %s147_s29, %s507_s4  ;;  %s606_s5 = smov [#allocation2]  }
  0x15   : > { %s512_s6 = sshll.u32 %s606_s5, 4  ;;  %s513_s6 = int_to_ptr.vmem [resolvable:$false] %s512_s6 }
  0x16   : > { %p510_p0 = pnand %p508_p13, %p496_p12  ;;  %s514_s7 = scalar_lea.vmem %s513_s6, 256 }
  0x17   : > { %p515_p2 = scmp.lt.s32.totalorder %s147_s29, %s513_s6  ;;  %p516_p3 = scmp.lt.s32.totalorder %s514_s7, %s507_s4 }
  0x18   : > { %p511_p1 = pneg %p510_p0 }
  0x19   : > { %p517_p4 = por %p516_p3, %p515_p2 }
  0x1b   : > { %p518_p5 = pnand %p517_p4, %p511_p1 }
  0x1d   : > { %521 = shalt.err (!%p518_p5)
}
  0x1e   : > { %434 = dma.hbm_to_vmem [thread:$0]  (!%p684_p9), %s144_s27, 128, %s147_s29, %s133_s3  }
  0x1f   : > { %p702_p6 = pnand %p420_p10, %p172_p11  ;;  %s165_s17 = scalar_lea.hbm %s759_s1, %s425_s23 }
  0x20   : > { %s157_s18 = scalar_lea.vmem [#allocation4], %s414_s24  ;;  %s154_s25 = scalar_lea.sflag [#allocation5], %s675_s22 }
  0x21   : > { %s167_s19 = sshll.u32 %s157_s18, 4  ;;  %s607_s27 = smov [#allocation4]   ;;  %s168_s19 = int_to_ptr.vmem [resolvable:$true] %s167_s19 }
  0x22   : > { %s535_s26 = scalar_lea.vmem %s168_s19, 128  ;;  %s540_s28 = sshll.u32 %s607_s27, 4  ;;  %s541_s28 = int_to_ptr.vmem [resolvable:$false] %s540_s28 }
  0x23   : > { %p536_p8 = scmp.ne.s32.totalorder %s168_s19, %s535_s26  ;;  %s542_s29 = scalar_lea.vmem %s541_s28, 256 }
  0x24   : > { %p543_p10 = scmp.lt.s32.totalorder %s168_s19, %s541_s28  ;;  %p544_p11 = scmp.lt.s32.totalorder %s542_s29, %s535_s26 }
  0x25   : > { %p538_p13 = pnand %p536_p8, %p496_p12 }
  0x26   : > { %p545_p1 = por %p544_p11, %p543_p10 }
  0x27   : > { %p539_p0 = pneg %p538_p13 }
  0x29   : > { %p546_p2 = pnand %p545_p1, %p539_p0 }
  0x2b   : > { %549 = shalt.err (!%p546_p2)
}
  0x2c   : > { %437 = dma.hbm_to_vmem [thread:$0]  (!%p684_p9), %s165_s17, 128, %s168_s19, %s154_s25  }
  0x2d   : > { %176 = sbr.rel (%p702_p6) target bundleno = 284 (0x11c), region = 28  ;;  %s178_s22 = sand.u32 (!%p702_p6), 1, %s588_s10  }
  0x2e   : > { %s421_s23 = sshll.u32 (!%p702_p6), %s178_s22, 3  ;;  %s179_s24 = scalar_lea.sflag (!%p702_p6), [#allocation3], %s178_s22 }
  0x2f   : > { %s182_s3 = scalar_lea.vmem (!%p702_p6), [#allocation2], %s421_s23 }
  0x32   : > { %575 = dma.done.wait (%p666_p7), %s179_s24, 128  }
  0x33   : > { %577 = vsyncadd (%p666_p7), %s179_s24, 4294967168  ;;  %s188_s4 = scalar_lea.sflag [#allocation5], %s178_s22  ;;  %s722_s5 = scalar_lea.vmem [#allocation4], %s421_s23 }
  0x34   : > { %579 = dma.done.wait (%p666_p7), %s188_s4, 128  }
  0x35   : > { %581 = vsyncadd (%p666_p7), %s188_s4, 4294967168  ;;  %vm230_vm0 = vcmask 1043456   ;;  %v226_v0 = vld [vmem:[%s182_s3] sm:$0xff]  ;;  %v279_v39 = vld [vmem:[%s722_s5] sm:$0xff]  ;;  %p220_p7 = scmp.lt.s32.totalorder %s596_s12, 1  ;;  %vm302_vm1 = vcmask 0  }
  0x36   : > { %v228_v1 = vcombine.high %v226_v0, %v226_v0  ;;  %v231_v2 = vsel %vm230_vm0, %v226_v0, -inf  ;;  %v280_v42 = vsub.f32 0.0, %v279_v39 }
  0x37   : > { %v232_v3 = vrot.slane %v231_v2, 4  ;;  %s773_s12 = smov (!%p220_p7, %s596_s12), 1 }
  0x38   : > { %v238_v4 = vsel %vm230_vm0, %v228_v1, -inf  ;;  %s225_s6 = scalar_lea.vmem %s760_s2, %s773_s12 }
  0x39   : > { %v233_v5 = vmax.f32 %v231_v2, %v232_v3  ;;  %v239_v6 = vrot.slane %v238_v4, 4 }
  0x3b   : > { %v234_v7 = vrot.slane %v233_v5, 2  ;;  %v240_v8 = vmax.f32 %v238_v4, %v239_v6 }
  0x3d   : > { %v235_v9 = vmax.f32 %v233_v5, %v234_v7  ;;  %v241_v10 = vrot.slane %v240_v8, 2 }
  0x3f   : > { %v236_v11 = vrot.slane %v235_v9, 1  ;;  %v242_v12 = vmax.f32 %v240_v8, %v241_v10 }
  0x41   : > { %v237_v13 = vmax.f32 %v235_v9, %v236_v11  ;;  %v243_v14 = vrot.slane %v242_v12, 1 }
  0x43   : > { %v244_v15 = vmax.f32 %v242_v12, %v243_v14 }
  0x45   : > { %v247_v16 = vcombine.low %v237_v13, %v244_v15 }
  0x47   : > { %v249_v17 = vsub.f32 %v226_v0, %v247_v16 }
  0x49   : > { %v250_v18 = vmul.f32 1.442695, %v249_v17 }
  0x4b   : > { %488 = vpow2.f32 %v250_v18 }
  0x58   : > { %v489_v19 = vpop.eup %488 }
  0x59   : > { %v253_v20 = vcombine.high %v489_v19, %v489_v19  ;;  %v255_v21 = vsel %vm230_vm0, %v489_v19, 0.0 }
  0x5a   : > { %v256_v22 = vrot.slane %v255_v21, 4 }
  0x5b   : > { %v262_v23 = vsel %vm230_vm0, %v253_v20, 0.0 }
  0x5c   : > { %v257_v24 = vadd.f32 %v256_v22, %v255_v21  ;;  %v263_v25 = vrot.slane %v262_v23, 4 }
  0x5e   : > { %v258_v26 = vrot.slane %v257_v24, 2  ;;  %v264_v27 = vadd.f32 %v263_v25, %v262_v23 }
  0x60   : > { %v259_v28 = vadd.f32 %v258_v26, %v257_v24  ;;  %v265_v29 = vrot.slane %v264_v27, 2 }
  0x62   : > { %v260_v30 = vrot.slane %v259_v28, 1  ;;  %v266_v31 = vadd.f32 %v265_v29, %v264_v27 }
  0x64   : > { %v261_v32 = vadd.f32 %v260_v30, %v259_v28  ;;  %v267_v33 = vrot.slane %v266_v31, 1 }
  0x66   : > { %v268_v34 = vadd.f32 %v267_v33, %v266_v31  ;;  %490 = vlog2.f32 %v261_v32 }
  0x68   : > { %492 = vlog2.f32 %v268_v34 }
  0x73   : > { %v491_v35 = vpop.eup %490 }
  0x74   : > { %v270_v36 = vmul.f32 0.6931472, %v491_v35 }
  0x75   : > { %v493_v37 = vpop.eup %492 }
  0x76   : > { %v272_v38 = vmul.f32 0.6931472, %v493_v37 }
  0x78   : > { %v275_v40 = vcombine.low %v270_v36, %v272_v38 }
  0x7a   : > { %v277_v41 = vsub.f32 %v249_v17, %v275_v40 }
  0x7c   : > { %v278_v43 = vmax.f32 %v277_v41, -13.815511 }
  0x7e   : > { %v281_v44 = vmul.f32 %v280_v42, %v278_v43 }
  0x80   : > { %v283_v45 = vcombine.high %v281_v44, %v281_v44  ;;  %v285_v46 = vsel %vm230_vm0, %v281_v44, 0.0 }
  0x81   : > { %v286_v47 = vrot.slane %v285_v46, 4 }
  0x82   : > { %v292_v48 = vsel %vm230_vm0, %v283_v45, 0.0 }
  0x83   : > { %v287_v49 = vadd.f32 %v286_v47, %v285_v46  ;;  %v293_v50 = vrot.slane %v292_v48, 4 }
  0x85   : > { %v288_v51 = vrot.slane %v287_v49, 2  ;;  %v294_v52 = vadd.f32 %v293_v50, %v292_v48 }
  0x87   : > { %v289_v53 = vadd.f32 %v288_v51, %v287_v49  ;;  %v295_v54 = vrot.slane %v294_v52, 2 }
  0x89   : > { %v290_v55 = vrot.slane %v289_v53, 1  ;;  %v296_v56 = vadd.f32 %v295_v54, %v294_v52 }
  0x8b   : > { %v291_v57 = vadd.f32 %v290_v55, %v289_v53  ;;  %v297_v58 = vrot.slane %v296_v56, 1 }
  0x8d   : > { %v298_v59 = vadd.f32 %v297_v58, %v296_v56 }
  0x8f   : > { %v299_v60 = vadd.f32 %v298_v59, %v291_v57 }
  0x91   : > { %300 = vadd.xlane.f32.xlu0 %v299_v60 }
 0x11a   : > { %v301_v61 = vpop.xlane.xlu0 %300 }
 0x11b   : > { %303 = vst.msk [vmem:[%s225_s6] sm:$0x1] %vm302_vm1, %v301_v61 }
 0x11c PF: > { %s18_s14 = sadd.s32 1, %s604_s14   ;;  %s765_s9 = smov %s588_s10 }
 0x11d   : > { %p15_p9 = scmp.ge.s32.totalorder %s18_s14, 4   ;;  %s766_s10 = smov %s592_s11 }
 0x11e   : > { %s767_s11 = smov %s672_s21  ;;  %s768_s12 = smov %s600_s13 }
 0x11f   : > { %s769_s13 = smov %s771_s16  ;;  %17 = sbr.rel (!%p15_p9) target bundleno = 6 (0x6), region = 81 }
 0x124   :  { %327 = vsyncpa [#allocation3], 1 }
 0x125   :  { %329 = vsyncpa [#allocation3 + $0x1], 1 }
 0x126   :  { %330 = vsyncpa [#allocation5], 1 }
 0x127   :  { %332 = vsyncpa [#allocation5 + $0x1], 1 }

</bundles_post_ra>
